<compile_context>
chip_gen: v7x
topology: tpu7x:2x2x1
jax: 0.10.0
libtpu: 0.0.40
codegen_flags: <defaults>
</compile_context>

<pallas_src>
import functools

import jax
import jax.numpy as jnp
from jax.experimental import pallas as pl
from jax.experimental.pallas import tpu as pltpu

LANES = 128
ROW_ALIGN = 16  # bf16 sublane-packing tile height (2 rows per 32-bit sublane)


def _round_up(v, m):
    return ((v + m - 1) // m) * m


# ----------------------------------------------------------------------------
# Pallas kernel: full PDHGNN forward (num_layers = 2), gridless
# ----------------------------------------------------------------------------
def _pdhgnn_kernel(x_ref, hg_ref, pd_ref, w_ref, b_ref,
                   x_out_ref, topo1_out_ref, *, offs, hidden):
    """Every operand is a whole VMEM-resident array (no grid).

    w_ref : (128, 128) bf16 — six zero-padded weight slabs stacked along the
            sublane axis at 16-row-aligned static offsets `offs`:
              0: tw1 (5   -> Cin)   1: tw2 (Cin -> Cin)
              2: gw0 (Cin -> H)     3: gw1 (H   -> H)
              4: lw0 (Cin -> H)     5: lw1 (H   -> H)
            fan_out is zero-padded to 128 lanes; this keeps feature lanes
            beyond the true fan_out exactly 0 through every layer.
    b_ref : (8, 128) f32 bias rows in the same order (rows 6,7 are padding).
    """
    f32 = jnp.float32
    bf16 = jnp.bfloat16
    cin = x_ref.shape[1]

    def dense(a, k):
        # (M, K_true) @ slab_k (sliced to its true fan_in), f32 accumulation.
        w = w_ref[offs[k]:offs[k] + a.shape[1], :]
        return (jnp.dot(a.astype(bf16), w, preferred_element_type=f32)
                + b_ref[k:k + 1, :])

    # ---- topology branch: per-point MLP + mean pool -> (1, 128) -------------
    pd = pd_ref[...]                                        # (P, 5), unpadded
    h = jnp.maximum(dense(pd, 0), 0.0)                      # (P, 128)
    h = jnp.maximum(dense(h[:, :cin], 1), 0.0)              # (P, 128)
    topo = jnp.sum(h, axis=0, keepdims=True) * (1.0 / pd.shape[0])
    topo1_out_ref[...] = topo

    # ---- topology gates: two 1-row matmuls on the MXU -----------------------
    t = dense(topo[:, :cin], 4)            # topo @ lw0 + lb0
    gate0 = 1.0 + t                        # x + x*topo == x * (1 + topo)
    t = dense(t[:, :hidden], 5)            # ... @ lw1 + lb1
    gate1 = 1.0 + t

    # ---- HGNN layers: x <- relu((hg @ (x W + b)) * gate) --------------------
    hg = hg_ref[...].astype(bf16)                           # (N, N)

    xw = dense(x_ref[...], 2)                               # (N, 128)
    x = jnp.dot(hg, xw.astype(bf16), preferred_element_type=f32)
    x = jnp.maximum(x * gate0, 0.0)

    xw = dense(x[:, :hidden], 3)
    x = jnp.dot(hg, xw.astype(bf16), preferred_element_type=f32)
    x = jnp.maximum(x * gate1, 0.0)

    x_out_ref[...] = x


# ----------------------------------------------------------------------------
# Wrapper
# ----------------------------------------------------------------------------
def pdhgnn_forward(x, hg, pd, packed):
    """x: (N, Cin), hg: (N, N), pd: (P, 5) -> (x_out (N, H), topo1 (1, Cin))."""
    N, cin = x.shape
    P, pd_ch = pd.shape
    W, B = packed["W"], packed["B"]
    C = W.shape[1]                              # 128 (lane-padded width)
    hidden = packed["hidden_channels"]

    flops = 2 * (P * pd_ch * cin + P * cin * cin          # topology MLP
                 + cin * hidden + hidden * hidden         # gate linears
                 + N * cin * hidden + N * hidden * hidden # 2x (x @ W + b)
                 + 2 * N * N * hidden)                    # 2x hg @ (.)
    bytes_accessed = ((x.size + hg.size + pd.size + B.size) * 4
                      + W.size * 2 + (N * C + C) * 4)

    vmem = pl.BlockSpec(memory_space=pltpu.MemorySpace.VMEM)
    x_full, topo_full = pl.pallas_call(
        functools.partial(_pdhgnn_kernel, offs=packed["offs"], hidden=hidden),
        out_shape=(jax.ShapeDtypeStruct((N, C), jnp.float32),
                   jax.ShapeDtypeStruct((1, C), jnp.float32)),
        in_specs=[vmem] * 5,
        out_specs=(vmem, vmem),
        cost_estimate=pl.CostEstimate(
            flops=flops, transcendentals=0, bytes_accessed=bytes_accessed),
    )(x, hg, pd, W, B)

    # Lane-dense (N,128)/(1,128) stores inside the kernel; slice back here.
    # (If a downstream consumer can take the padded slab, fold these slices
    #  into it instead of materializing standalone slice ops.)
    return x_full[:, :hidden], topo_full[:, :cin]


# ----------------------------------------------------------------------------
# Deterministic parameter init (PyTorch nn.Linear style: U(-1/sqrt(fan_in),..))
# ----------------------------------------------------------------------------
def _linear_init(key, fan_in, fan_out):
    kw, kb = jax.random.split(key)
    bound = 1.0 / jnp.sqrt(jnp.float32(fan_in))
    w = jax.random.uniform(kw, (fan_in, fan_out), jnp.float32, -bound, bound)
    b = jax.random.uniform(kb, (1, fan_out), jnp.float32, -bound, bound)
    return w, b


def make_params(input_channels, hidden_channels, pd_channels=5, seed=403):
    key = jax.random.PRNGKey(seed)
    keys = jax.random.split(key, 6)
    p = {}
    # topology branch: 5 -> C_in -> C_in
    p["tw1"], p["tb1"] = _linear_init(keys[0], pd_channels, input_channels)
    p["tw2"], p["tb2"] = _linear_init(keys[1], input_channels, input_channels)
    # HGNNConv layers: C_in -> H, H -> H
    p["gw0"], p["gb0"] = _linear_init(keys[2], input_channels, hidden_channels)
    p["gw1"], p["gb1"] = _linear_init(keys[3], hidden_channels, hidden_channels)
    # topology linears: C_in -> H, H -> H
    p["lw0"], p["lb0"] = _linear_init(keys[4], input_channels, hidden_channels)
    p["lw1"], p["lb1"] = _linear_init(keys[5], hidden_channels, hidden_channels)
    return p


def pack_params(p, input_channels, hidden_channels, pd_channels=5):
    """Pack all weights into one small bf16 slab and one f32 bias block.

    fan_in is padded to the bf16 sublane tile (16 rows), fan_out to 128 lanes.
    The zero lane-padding of fan_out is load-bearing: it keeps feature lanes
    >= hidden (resp. cin) exactly 0 through every layer, so the wrapper slice
    recovers the un-padded result.
    """
    assert max(input_channels, hidden_channels, pd_channels) <= LANES
    order_w = ("tw1", "tw2", "gw0", "gw1", "lw0", "lw1")
    order_b = ("tb1", "tb2", "gb0", "gb1", "lb0", "lb1")
    slabs, offs, row = [], [], 0
    for k in order_w:
        w = p[k]
        rows = _round_up(w.shape[0], ROW_ALIGN)
        slab = jnp.zeros((rows, LANES), jnp.float32)
        slab = slab.at[:w.shape[0], :w.shape[1]].set(w)
        slabs.append(slab)
        offs.append(row)
        row += rows
    W = jnp.concatenate(slabs, axis=0).astype(jnp.bfloat16)   # (128, 128) bf16
    B = jnp.zeros((8, LANES), jnp.float32)
    for i, k in enumerate(order_b):
        b = p[k]
        B = B.at[i, :b.shape[1]].set(b[0])
    return {"W": W, "B": B, "offs": tuple(offs),
            "hidden_channels": hidden_channels}


# ----------------------------------------------------------------------------
# Pure-JAX reference (numerical sanity check, f32 throughout)
# ----------------------------------------------------------------------------
def pdhgnn_reference(x, hg, pd, p):
    h = jax.nn.relu(pd @ p["tw1"] + p["tb1"])
    h = jax.nn.relu(h @ p["tw2"] + p["tb2"])
    topo = jnp.mean(h, axis=0, keepdims=True)
    topo1 = topo
    for gw, gb, lw, lb in [
        (p["gw0"], p["gb0"], p["lw0"], p["lb0"]),
        (p["gw1"], p["gb1"], p["lw1"], p["lb1"]),
    ]:
        x = hg @ (x @ gw + gb)
        topo = topo @ lw + lb
        x = x + x * topo
        x = jax.nn.relu(x)
    return x, topo1


if __name__ == "__main__":
    N = 16                 # number of hypergraph nodes
    P = 8                  # number of persistence-diagram points
    input_channels = 8
    hidden_channels = 32

    key = jax.random.PRNGKey(0)
    kx, khg, kpd = jax.random.split(key, 3)
    x = jax.random.normal(kx, (N, input_channels), jnp.float32)
    # symmetric, normalized-ish dense hypergraph smoothing matrix
    H_inc = (jax.random.uniform(khg, (N, N)) > 0.7).astype(jnp.float32)
    hg = (H_inc @ H_inc.T) / jnp.float32(N)
    pd = jax.random.normal(kpd, (P, 5), jnp.float32)

    params = make_params(input_channels, hidden_channels)
    packed = pack_params(params, input_channels, hidden_channels)

    x_out, topo1 = pdhgnn_forward(x, hg, pd, packed)
    jax.block_until_ready((x_out, topo1))

    x_ref_out, topo1_ref = pdhgnn_reference(x, hg, pd, params)
    assert x_out.shape == (N, hidden_channels)
    assert topo1.shape == (1, input_channels)
    # bf16 weight storage (f32 accumulation) vs. f32 reference -> loosened tol
    assert jnp.allclose(x_out, x_ref_out, atol=3e-2, rtol=3e-2)
    assert jnp.allclose(topo1, topo1_ref, atol=3e-2, rtol=3e-2)

    print("KERNEL_OK")
</pallas_src>

<mosaic_0001>
module attributes {stable_mosaic.version = 11 : i64} {
  func.func @_pdhgnn_kernel(%arg0: memref<16x8xf32, #tpu.memory_space<vmem>>, %arg1: memref<16x16xf32, #tpu.memory_space<vmem>>, %arg2: memref<8x5xf32, #tpu.memory_space<vmem>>, %arg3: memref<128x128xbf16, #tpu.memory_space<vmem>>, %arg4: memref<8x128xf32, #tpu.memory_space<vmem>>, %arg5: memref<16x128xf32, #tpu.memory_space<vmem>>, %arg6: memref<1x128xf32, #tpu.memory_space<vmem>>) attributes {dimension_semantics = [], scalar_prefetch = 0 : i64, scratch_operands = 0 : i64, tpu.core_type = #tpu.core_type<tc>} {
    %c0 = arith.constant 0 : index
    %c0_0 = arith.constant 0 : index
    %0 = vector.load %arg2[%c0, %c0_0] : memref<8x5xf32, #tpu.memory_space<vmem>>, vector<8x5xf32>
    %c0_1 = arith.constant 0 : index
    %c0_2 = arith.constant 0 : index
    %1 = vector.load %arg3[%c0_1, %c0_2] : memref<128x128xbf16, #tpu.memory_space<vmem>>, vector<5x128xbf16>
    %2 = arith.truncf %0 : vector<8x5xf32> to vector<8x5xbf16>
    %cst = arith.constant dense<0.000000e+00> : vector<8x128xf32>
    %3 = tpu.matmul %2, %1, %cst {dimension_numbers = #tpu.dot_dimension_numbers<[1], [0], [0], [1], [0, 0, 1, 1], [], []>} : vector<8x5xbf16>, vector<5x128xbf16>, vector<8x128xf32> -> vector<8x128xf32>
    %c0_3 = arith.constant 0 : index
    %c0_4 = arith.constant 0 : index
    %4 = vector.load %arg4[%c0_3, %c0_4] : memref<8x128xf32, #tpu.memory_space<vmem>>, vector<1x128xf32>
    %5 = vector.broadcast %4 : vector<1x128xf32> to vector<8x128xf32>
    %6 = arith.addf %3, %5 : vector<8x128xf32>
    %cst_5 = arith.constant 0.000000e+00 : f32
    %7 = vector.broadcast %cst_5 : f32 to vector<8x128xf32>
    %8 = arith.maximumf %6, %7 : vector<8x128xf32>
    %9 = vector.extract_strided_slice %8 {offsets = [0, 0], sizes = [8, 8], strides = [1, 1]} : vector<8x128xf32> to vector<8x8xf32>
    %c16 = arith.constant 16 : index
    %c0_6 = arith.constant 0 : index
    %10 = vector.load %arg3[%c16, %c0_6] : memref<128x128xbf16, #tpu.memory_space<vmem>>, vector<8x128xbf16>
    %11 = arith.truncf %9 : vector<8x8xf32> to vector<8x8xbf16>
    %cst_7 = arith.constant dense<0.000000e+00> : vector<8x128xf32>
    %12 = tpu.matmul %11, %10, %cst_7 {dimension_numbers = #tpu.dot_dimension_numbers<[1], [0], [0], [1], [0, 0, 1, 1], [], []>} : vector<8x8xbf16>, vector<8x128xbf16>, vector<8x128xf32> -> vector<8x128xf32>
    %c1 = arith.constant 1 : index
    %c0_8 = arith.constant 0 : index
    %13 = vector.load %arg4[%c1, %c0_8] : memref<8x128xf32, #tpu.memory_space<vmem>>, vector<1x128xf32>
    %14 = vector.broadcast %13 : vector<1x128xf32> to vector<8x128xf32>
    %15 = arith.addf %12, %14 : vector<8x128xf32>
    %cst_9 = arith.constant 0.000000e+00 : f32
    %16 = vector.broadcast %cst_9 : f32 to vector<8x128xf32>
    %17 = arith.maximumf %15, %16 : vector<8x128xf32>
    %cst_10 = arith.constant dense<0.000000e+00> : vector<128xf32>
    %18 = vector.multi_reduction <add>, %17, %cst_10 [0] : vector<8x128xf32> to vector<128xf32>
    %19 = vector.shape_cast %18 : vector<128xf32> to vector<1x128xf32>
    %cst_11 = arith.constant 1.250000e-01 : f32
    %20 = vector.broadcast %cst_11 : f32 to vector<1x128xf32>
    %21 = arith.mulf %19, %20 : vector<1x128xf32>
    %c0_12 = arith.constant 0 : index
    %c0_13 = arith.constant 0 : index
    %22 = vector.load %arg6[%c0_12, %c0_13] : memref<1x128xf32, #tpu.memory_space<vmem>>, vector<1x128xf32>
    tpu.vector_store %arg6[%c0_12, %c0_13], %21 {strides = array<i32>} : memref<1x128xf32, #tpu.memory_space<vmem>>, vector<1x128xf32>,
    %23 = vector.extract_strided_slice %21 {offsets = [0, 0], sizes = [1, 8], strides = [1, 1]} : vector<1x128xf32> to vector<1x8xf32>
    %c80 = arith.constant 80 : index
    %c0_14 = arith.constant 0 : index
    %24 = vector.load %arg3[%c80, %c0_14] : memref<128x128xbf16, #tpu.memory_space<vmem>>, vector<8x128xbf16>
    %25 = arith.truncf %23 : vector<1x8xf32> to vector<1x8xbf16>
    %cst_15 = arith.constant dense<0.000000e+00> : vector<1x128xf32>
    %26 = tpu.matmul %25, %24, %cst_15 {dimension_numbers = #tpu.dot_dimension_numbers<[1], [0], [0], [1], [0, 0, 1, 1], [], []>} : vector<1x8xbf16>, vector<8x128xbf16>, vector<1x128xf32> -> vector<1x128xf32>
    %c4 = arith.constant 4 : index
    %c0_16 = arith.constant 0 : index
    %27 = vector.load %arg4[%c4, %c0_16] : memref<8x128xf32, #tpu.memory_space<vmem>>, vector<1x128xf32>
    %28 = arith.addf %26, %27 : vector<1x128xf32>
    %cst_17 = arith.constant 1.000000e+00 : f32
    %29 = vector.broadcast %cst_17 : f32 to vector<1x128xf32>
    %30 = arith.addf %29, %28 : vector<1x128xf32>
    %31 = vector.extract_strided_slice %28 {offsets = [0, 0], sizes = [1, 32], strides = [1, 1]} : vector<1x128xf32> to vector<1x32xf32>
    %c96 = arith.constant 96 : index
    %c0_18 = arith.constant 0 : index
    %32 = vector.load %arg3[%c96, %c0_18] : memref<128x128xbf16, #tpu.memory_space<vmem>>, vector<32x128xbf16>
    %33 = arith.truncf %31 : vector<1x32xf32> to vector<1x32xbf16>
    %cst_19 = arith.constant dense<0.000000e+00> : vector<1x128xf32>
    %34 = tpu.matmul %33, %32, %cst_19 {dimension_numbers = #tpu.dot_dimension_numbers<[1], [0], [0], [1], [0, 0, 1, 1], [], []>} : vector<1x32xbf16>, vector<32x128xbf16>, vector<1x128xf32> -> vector<1x128xf32>
    %c5 = arith.constant 5 : index
    %c0_20 = arith.constant 0 : index
    %35 = vector.load %arg4[%c5, %c0_20] : memref<8x128xf32, #tpu.memory_space<vmem>>, vector<1x128xf32>
    %36 = arith.addf %34, %35 : vector<1x128xf32>
    %cst_21 = arith.constant 1.000000e+00 : f32
    %37 = vector.broadcast %cst_21 : f32 to vector<1x128xf32>
    %38 = arith.addf %37, %36 : vector<1x128xf32>
    %c0_22 = arith.constant 0 : index
    %c0_23 = arith.constant 0 : index
    %39 = vector.load %arg1[%c0_22, %c0_23] : memref<16x16xf32, #tpu.memory_space<vmem>>, vector<16x16xf32>
    %40 = arith.truncf %39 : vector<16x16xf32> to vector<16x16xbf16>
    %c0_24 = arith.constant 0 : index
    %c0_25 = arith.constant 0 : index
    %41 = vector.load %arg0[%c0_24, %c0_25] : memref<16x8xf32, #tpu.memory_space<vmem>>, vector<16x8xf32>
    %c32 = arith.constant 32 : index
    %c0_26 = arith.constant 0 : index
    %42 = vector.load %arg3[%c32, %c0_26] : memref<128x128xbf16, #tpu.memory_space<vmem>>, vector<8x128xbf16>
    %43 = arith.truncf %41 : vector<16x8xf32> to vector<16x8xbf16>
    %cst_27 = arith.constant dense<0.000000e+00> : vector<16x128xf32>
    %44 = tpu.matmul %43, %42, %cst_27 {dimension_numbers = #tpu.dot_dimension_numbers<[1], [0], [0], [1], [0, 0, 1, 1], [], []>} : vector<16x8xbf16>, vector<8x128xbf16>, vector<16x128xf32> -> vector<16x128xf32>
    %c2 = arith.constant 2 : index
    %c0_28 = arith.constant 0 : index
    %45 = vector.load %arg4[%c2, %c0_28] : memref<8x128xf32, #tpu.memory_space<vmem>>, vector<1x128xf32>
    %46 = vector.broadcast %45 : vector<1x128xf32> to vector<16x128xf32>
    %47 = arith.addf %44, %46 : vector<16x128xf32>
    %48 = arith.truncf %47 : vector<16x128xf32> to vector<16x128xbf16>
    %cst_29 = arith.constant dense<0.000000e+00> : vector<16x128xf32>
    %49 = tpu.matmul %40, %48, %cst_29 {dimension_numbers = #tpu.dot_dimension_numbers<[1], [0], [0], [1], [0, 0, 1, 1], [], []>} : vector<16x16xbf16>, vector<16x128xbf16>, vector<16x128xf32> -> vector<16x128xf32>
    %50 = vector.broadcast %30 : vector<1x128xf32> to vector<16x128xf32>
    %51 = arith.mulf %49, %50 : vector<16x128xf32>
    %cst_30 = arith.constant 0.000000e+00 : f32
    %52 = vector.broadcast %cst_30 : f32 to vector<16x128xf32>
    %53 = arith.maximumf %51, %52 : vector<16x128xf32>
    %54 = vector.extract_strided_slice %53 {offsets = [0, 0], sizes = [16, 32], strides = [1, 1]} : vector<16x128xf32> to vector<16x32xf32>
    %c48 = arith.constant 48 : index
    %c0_31 = arith.constant 0 : index
    %55 = vector.load %arg3[%c48, %c0_31] : memref<128x128xbf16, #tpu.memory_space<vmem>>, vector<32x128xbf16>
    %56 = arith.truncf %54 : vector<16x32xf32> to vector<16x32xbf16>
    %cst_32 = arith.constant dense<0.000000e+00> : vector<16x128xf32>
    %57 = tpu.matmul %56, %55, %cst_32 {dimension_numbers = #tpu.dot_dimension_numbers<[1], [0], [0], [1], [0, 0, 1, 1], [], []>} : vector<16x32xbf16>, vector<32x128xbf16>, vector<16x128xf32> -> vector<16x128xf32>
    %c3 = arith.constant 3 : index
    %c0_33 = arith.constant 0 : index
    %58 = vector.load %arg4[%c3, %c0_33] : memref<8x128xf32, #tpu.memory_space<vmem>>, vector<1x128xf32>
    %59 = vector.broadcast %58 : vector<1x128xf32> to vector<16x128xf32>
    %60 = arith.addf %57, %59 : vector<16x128xf32>
    %61 = arith.truncf %60 : vector<16x128xf32> to vector<16x128xbf16>
    %cst_34 = arith.constant dense<0.000000e+00> : vector<16x128xf32>
    %62 = tpu.matmul %40, %61, %cst_34 {dimension_numbers = #tpu.dot_dimension_numbers<[1], [0], [0], [1], [0, 0, 1, 1], [], []>} : vector<16x16xbf16>, vector<16x128xbf16>, vector<16x128xf32> -> vector<16x128xf32>
    %63 = vector.broadcast %38 : vector<1x128xf32> to vector<16x128xf32>
    %64 = arith.mulf %62, %63 : vector<16x128xf32>
    %cst_35 = arith.constant 0.000000e+00 : f32
    %65 = vector.broadcast %cst_35 : f32 to vector<16x128xf32>
    %66 = arith.maximumf %64, %65 : vector<16x128xf32>
    %c0_36 = arith.constant 0 : index
    %c0_37 = arith.constant 0 : index
    %67 = vector.load %arg5[%c0_36, %c0_37] : memref<16x128xf32, #tpu.memory_space<vmem>>, vector<16x128xf32>
    tpu.vector_store %arg5[%c0_36, %c0_37], %66 {strides = array<i32>} : memref<16x128xf32, #tpu.memory_space<vmem>>, vector<16x128xf32>,
    return
  }
}

</mosaic_0001>

<bundles_post_ra>
// kernel: tpu_custom_call.1
= control target key start
LH: loop header
LB: loop body
LE: loop exit
PB: predicated region body
PF: predicated region fallthrough
CT: control target
= control target key end

     0   :  { %12 = vsyncpa [#allocation3], 0  ;;  %s860_s0 = inlined_call_operand.vmem [shape: f32[16,8], index: 0, kind: input, shape index: {}]   ;;  %s861_s1 = inlined_call_operand.vmem [shape: f32[16,16], index: 1, kind: input, shape index: {}]   ;;  %s862_s2 = inlined_call_operand.vmem [shape: f32[8,5], index: 2, kind: input, shape index: {}]   ;;  %s863_s3 = inlined_call_operand.hbm [shape: bf16[128,128], index: 3, kind: input, shape index: {}]   ;;  %s864_s4 = inlined_call_operand.vmem [shape: f32[8,128], index: 4, kind: input, shape index: {}]   ;;  %s865_s5 = inlined_call_operand.hbm [shape: f32[16,128], index: 5, kind: output, shape index: {0}]   ;;  %s866_s6 = inlined_call_operand.hbm [shape: f32[1,128], index: 6, kind: output, shape index: {1}]  }
   0x1   :  { %13 = vsyncpa [#allocation4], 0 }
   0x2   :  { %14 = vsyncpa [#allocation7], 0  ;;  %s710_s21 = smov [#allocation2]   ;;  %s638_s25 = scalar_lea.hbm %s863_s3, 1024 }
   0x3   :  { %s26_s22 = sshll.u32 %s710_s21, 4  ;;  %p639_p0 = scmp.ne.s32.totalorder %s863_s3, %s638_s25  ;;  %s27_s22 = int_to_ptr.vmem [resolvable:$true] %s26_s22 }
   0x4   :  { %p642_p1 = scmp.lt.u32.totalorder %s638_s25, %s863_s3 }
   0x6   :  { %p644_p2 = pnand %p642_p1, %p639_p0 }
   0x8   :  { %647 = shalt.err (!%p644_p2)
}
   0x9   :  { %s648_s30 = scalar_lea.vmem %s27_s22, 1024  ;;  %p653_p4 = scmp.lt.s32.totalorder %s27_s22, %s27_s22 }
   0xa   :  { %p649_p3 = scmp.ne.s32.totalorder %s27_s22, %s648_s30  ;;  %p654_p5 = scmp.lt.s32.totalorder %s648_s30, %s648_s30 }
   0xc   :  { %p655_p6 = por %p654_p5, %p653_p4 }
   0xe   :  { %p656_p7 = pnand %p655_p6, %p649_p3 }
  0x10   :  { %659 = shalt.err (!%p656_p7)
}
  0x11   :  { %s711_s7 = smov 64   ;;  %s712_s8 = smov 4  }
  0x12   :  { %32 = dma.hbm_to_vmem [thread:$0]  %s863_s3, 1024, %s27_s22, [#allocation3], %s711_s7, %s711_s7, %s712_s8  }
  0x13   :  { %704 = dma.done.wait [#allocation3], 1024  }
  0x14   :  { %705 = vsyncadd [#allocation3], 4294966272  ;;  %vm51_vm0 = vcmask 1041408   ;;  %v713_v0 = vmov 0.0   ;;  %vm52_vm1 = vcmask 1042432   ;;  %v714_v1 = vmov 65535  }
  0x15   :  { %572 = vmatprep.subr.bf16.mxu0 %v713_v0  ;;  %578 = vmatprep.subr.bf16.mxu1 %v713_v0  ;;  %v53_v2 = vsel %vm51_vm0, 4294967295, %v714_v1  ;;  %vm715_vm2 = vmmov 0   ;;  %v40_v4 = vld [vmem:[#allocation2] sm:$0x7]  ;;  %v39_v5 = vld [vmem:[%s862_s2] sm:$0xff]  ;;  %vm47_vm3 = vcmask 39936   ;;  %v381_v63 = vlaneseq }
  0x16   :  { %574 = vmatprep.mubr.msk.bf16.mxu0 %vm715_vm2, %v713_v0  ;;  %580 = vmatprep.mubr.msk.bf16.mxu1 %vm715_vm2, %v713_v0  ;;  %v54_v3 = vsel %vm52_vm1, %v53_v2, 0  ;;  %v41_v7 = vpack.c.bf16 %v39_v5, %v39_v5  ;;  %v99_v8 = vld [vmem:[#allocation2 + $0x8] sm:$0xf]  ;;  %vm110_vm4 = vcmask 1043456   ;;  %vm106_vm5 = vcmask 64512   ;;  %v634_v20 = vld [vmem:[#allocation2 + $0x30] sm:$0xff]  }
  0x17   :  { %v56_v6 = vand.u32 %v54_v3, %v40_v4  ;;  %v112_v9 = vsel %vm110_vm4, %v99_v8, 0  ;;  %v538_v10 = vld [vmem:[%s864_s4] ss:$0 sm:$0xff]  ;;  %v540_v21 = vld [vmem:[%s864_s4 + $0x1] ss:$0 sm:$0xff]  ;;  %v280_v39 = vld [vmem:[%s860_s0 + $0x8] sm:$0xff] }
  0x18   :  { %579 = vmatpush3.bf16.msra.mxu1 %v112_v9  ;;  %v163_v18 = vld [vmem:[#allocation2 + $0x28] sm:$0xf]  ;;  %v281_v34 = vld [vmem:[#allocation2 + $0x10] sm:$0xf]  ;;  %v635_v41 = vld [vmem:[#allocation2 + $0x38] sm:$0xff]   ;;  %vm231_vm6 = vcmask 261120  }
  0x19   :  { %573 = vmatpush3.bf16.msra.mxu0 %v56_v6  ;;  %590 = vmatprep.subr.bf16.mxu1 %v713_v0  ;;  %v170_v19 = vsel %vm110_vm4, %v163_v18, 0  ;;  %v292_v37 = vsel %vm110_vm4, %v281_v34, 0  ;;  %v279_v38 = vld [vmem:[%s860_s0] sm:$0xff]  ;;  %v277_v57 = vld [vmem:[%s861_s1 + $0x8] sm:$0xff]  ;;  %vm336_vm7 = vcmask 130048   ;;  %v636_v60 = vld [vmem:[#allocation2 + $0x18] sm:$0xff]  }
  0x1a   :  { %584 = vmatprep.subr.bf16.mxu0 %v713_v0  ;;  %v282_v40 = vpack.c.bf16 %v280_v39, %v279_v38  ;;  %v165_v42 = vld [vmem:[%s864_s4 + $0x4] sm:$0x1]  ;;  %v546_v49 = vld [vmem:[%s864_s4 + $0x2] ss:$0 sm:$0xff]  ;;  %v637_v61 = vld [vmem:[#allocation2 + $0x20] sm:$0xff]   ;;  %v382_v4 = vshrl.u32 %v381_v63, 7 }
  0x1b   :  { %v276_v56 = vld [vmem:[%s861_s1] sm:$0xff]  ;;  %s716_s27 = smov [#allocation6]  }
  0x1c   :  { %575 = vmatmul.mubr.msk.bf16.vlgmr.msra.gmra.mrb[0].mxu0 %vm47_vm3, %v41_v7  ;;  %v278_v59 = vpack.c.bf16 %v277_v57, %v276_v56  ;;  %v383_v6 = vsub.s32 0, %v382_v4  ;;  %s525_s28 = sshll.u32 %s716_s27, 4  ;;  %s526_s28 = int_to_ptr.vmem [resolvable:$true] %s525_s28 }
  0x1d   :  { %586 = vmatprep.mubr.msk.bf16.mxu0 %vm715_vm2, %v713_v0  ;;  %585 = vmatpush3.bf16.msra.mxu0 %v170_v19  ;;  %s660_s29 = scalar_lea.vmem %s526_s28, 16  ;;  %s664_s30 = scalar_lea.vmem %s526_s28, 32 }
  0x1e   :  { %598 = vmatprep.subr.bf16.mxu0 %v713_v0  ;;  %p661_p8 = scmp.ne.s32.totalorder %s526_s28, %s660_s29  ;;  %p665_p9 = scmp.lt.s32.totalorder %s526_s28, %s526_s28 }
  0x1f   :  { %p666_p10 = scmp.lt.s32.totalorder %s664_s30, %s660_s29 }
  0x21   :  { %p667_p11 = por %p666_p10, %p665_p9 }
  0x23   :  { %p668_p12 = pnand %p667_p11, %p661_p8 }
  0xef   :  { %v92_v11 = vpop.f32.mrb[0].mxu0 }
  0xf0   :  { %v93_v12 = vadd.f32 %v538_v10, %v92_v11  ;;  %v576_v13 = vpop.f32.mrb[1].mxu0 }
  0xf1   :  { %v95_v14 = vpop.f32.mrb[2].mxu0 }
  0xf2   :  { %v98_v15 = vmax.f32 %v93_v12, 0.0  ;;  %v577_v16 = vpop.f32.mrb[3].mxu0 }
  0xf3   :  { %v549_v16 = vld [vmem:[%s864_s4 + $0x3] ss:$0 sm:$0xff] }
  0xf4   :  { %v100_v17 = vpack.c.bf16 %v98_v15, %v98_v15 }
  0xf6   :  { %581 = vmatmul.mubr.msk.bf16.vlgmr.msra.gmra.mrb[0].mxu1 %vm106_vm5, %v100_v17 }
  0xf7   :  { %594 = vmatprep.mubr.msk.bf16.mxu1 %vm715_vm2, %v713_v0  ;;  %591 = vmatpush3.bf16.msra.mxu1 %v634_v20 }
  0xf8   :  { %592 = vmatprep.subr.bf16.mxu1 %v713_v0 }
  0xfb   :  { %593 = vmatpush3.bf16.msra.mxu1 %v635_v41 }
  0xfc   :  { %604 = vmatprep.subr.bf16.mxu1 %v713_v0 }
 0x1c9   :  { %v148_v22 = vpop.f32.mrb[0].mxu1 }
 0x1ca   :  { %v149_v23 = vadd.f32 %v540_v21, %v148_v22  ;;  %v582_v24 = vpop.f32.mrb[1].mxu1 }
 0x1cb   :  { %v151_v25 = vpop.f32.mrb[2].mxu1 }
 0x1cc   :  { %v154_v26 = vmax.f32 %v149_v23, 0.0  ;;  %v583_v27 = vpop.f32.mrb[3].mxu1 }
 0x1ce   :  { %v155_v28 = vrot.slane %v154_v26, 4 }
 0x1d0   :  { %v156_v29 = vadd.f32 %v155_v28, %v154_v26 }
 0x1d2   :  { %v157_v30 = vrot.slane %v156_v29, 2 }
 0x1d4   :  { %v158_v31 = vadd.f32 %v157_v30, %v156_v29 }
 0x1d6   :  { %v159_v32 = vrot.slane %v158_v31, 1 }
 0x1d8   :  { %v160_v33 = vadd.f32 %v159_v32, %v158_v31 }
 0x1da   :  { %v161_v35 = vmul.f32 0.125, %v160_v33 }
 0x1dc   :  { %v164_v36 = vpack.c.bf16 %v161_v35, %v161_v35  ;;  %162 = vst [vmem:[#allocation6] sm:$0x1] %v161_v35 }
 0x1de   :  { %587 = vmatmul.mubr.msk.bf16.vlgmr.msra.gmra.mrb[4].mxu0 %vm106_vm5, %v164_v36 }
 0x1df   :  { %599 = vmatpush3.bf16.msra.mxu0 %v292_v37  ;;  %600 = vmatprep.mubr.msk.bf16.mxu0 %vm715_vm2, %v713_v0 }
 0x1e0   :  { %610 = vmatprep.subr.bf16.mxu0 %v713_v0 }
 0x1e6   :  { %601 = vmatmul.mubr.msk.bf16.vlgmr.msra.gmra.mrb[8].mxu0 %vm106_vm5, %v282_v40 }
 0x1e7   :  { %614 = vmatprep.mubr.msk.bf16.mxu0 %vm715_vm2, %v713_v0  ;;  %611 = vmatpush3.bf16.msra.mxu0 %v636_v60 }
 0x1e8   :  { %612 = vmatprep.subr.bf16.mxu0 %v713_v0 }
 0x1eb   :  { %613 = vmatpush3.bf16.msra.mxu0 %v637_v61 }
 0x2b1   :  { %v206_v43 = vpop.f32.mrb[4].mxu0 }
 0x2b2   :  { %v207_v44 = vadd.f32 %v206_v43, %v165_v42  ;;  %v588_v45 = vpop.f32.mrb[5].mxu0 }
 0x2b3   :  { %v209_v46 = vpop.f32.mrb[6].mxu0 }
 0x2b4   :  { %v217_v47 = vpack.c.bf16 %v207_v44, %v207_v44  ;;  %v589_v48 = vpop.f32.mrb[7].mxu0  ;;  %v212_v5 = vadd.f32 1.0, %v207_v44 }
 0x2b6   :  { %595 = vmatmul.mubr.msk.bf16.vlgmr.msra.gmra.mrb[4].mxu1 %vm231_vm6, %v217_v47  ;;  %v384_v7 = vrot.slane %v212_v5, %v383_v6 }
 0x2b7   :  { %606 = vmatprep.mubr.msk.bf16.mxu1 %vm715_vm2, %v713_v0 }
 0x2b9   :  { %v328_v50 = vpop.f32.mrb[8].mxu0 }
 0x2ba   :  { %v602_v51 = vpop.f32.mrb[9].mxu0  ;;  %v329_v53 = vadd.f32 %v546_v49, %v328_v50 }
 0x2bb   :  { %v331_v52 = vpop.f32.mrb[10].mxu0 }
 0x2bc   :  { %v332_v54 = vadd.f32 %v546_v49, %v331_v52  ;;  %v603_v55 = vpop.f32.mrb[11].mxu0 }
 0x2be   :  { %v335_v58 = vpack.c.bf16 %v332_v54, %v329_v53 }
 0x2c0   :  { %605 = vmatpush3.bf16.msra.mxu1 %v335_v58 }
 0x2c1   :  { %618 = vmatprep.subr.bf16.mxu1 %v713_v0 }
 0x2c3   :  { %607 = vmatmul.mubr.msk.bf16.vlgmr.msra.gmra.mrb[8].mxu1 %vm336_vm7, %v278_v59 }
 0x2c4   :  { %620 = vmatprep.mubr.msk.bf16.mxu1 %vm715_vm2, %v713_v0 }
 0x389   :  { %v269_v62 = vpop.f32.mrb[4].mxu1 }
 0x38a   :  { %v596_v1 = vpop.f32.mrb[5].mxu1 }
 0x38b   :  { %v272_v2 = vpop.f32.mrb[6].mxu1 }
 0x38c   :  { %v597_v3 = vpop.f32.mrb[7].mxu1 }
 0x396   :  { %v374_v8 = vpop.f32.mrb[8].mxu1 }
 0x397   :  { %v385_v9 = vmul.f32 %v384_v7, %v374_v8  ;;  %v608_v10 = vpop.f32.mrb[9].mxu1 }
 0x398   :  { %v377_v11 = vpop.f32.mrb[10].mxu1 }
 0x399   :  { %v386_v12 = vmul.f32 %v384_v7, %v377_v11  ;;  %v609_v13 = vpop.f32.mrb[11].mxu1  ;;  %v387_v14 = vmax.f32 %v385_v9, 0.0 }
 0x39b   :  { %v388_v15 = vmax.f32 %v386_v12, 0.0 }
 0x39d   :  { %v393_v0 = vpack.c.bf16 %v388_v15, %v387_v14 }
 0x39f   :  { %615 = vmatmul.mubr.msk.bf16.vlgmr.msra.gmra.mrb[12].mxu0 %vm231_vm6, %v393_v0 }
 0x472   :  { %v448_v17 = vpop.f32.mrb[12].mxu0 }
 0x473   :  { %v616_v18 = vpop.f32.mrb[13].mxu0  ;;  %v449_v20 = vadd.f32 %v549_v16, %v448_v17 }
 0x474   :  { %v451_v19 = vpop.f32.mrb[14].mxu0 }
 0x475   :  { %v452_v21 = vadd.f32 %v549_v16, %v451_v19  ;;  %v617_v22 = vpop.f32.mrb[15].mxu0 }
 0x477   :  { %v455_v23 = vpack.c.bf16 %v452_v21, %v449_v20 }
 0x479   :  { %619 = vmatpush3.bf16.msra.mxu1 %v455_v23 }
 0x47c   :  { %621 = vmatmul.mubr.msk.bf16.vlgmr.msra.gmra.mrb[12].mxu1 %vm336_vm7, %v278_v59 }
 0x47d   :  { %671 = shalt.err (!%p668_p12)
}
 0x47e   :  { %s672_s9 = scalar_lea.hbm %s866_s6, 16 }
 0x47f   :  { %p673_p13 = scmp.ne.s32.totalorder %s866_s6, %s672_s9  ;;  %p676_p0 = scmp.lt.u32.totalorder %s672_s9, %s866_s6 }
 0x481   :  { %p678_p1 = pnand %p676_p0, %p673_p13 }
 0x483   :  { %681 = shalt.err (!%p678_p1)
}
 0x484   :  { %528 = dma.vmem_to_hbm [thread:$0]  %s526_s28, 16, %s866_s6, [#allocation7]   ;;  %v218_v24 = vld [vmem:[%s864_s4 + $0x5] sm:$0x1] }
 0x485   :  { %v270_v25 = vadd.f32 %v269_v62, %v218_v24  ;;  %s717_s16 = smov [#allocation5]  }
 0x486   :  { %s512_s17 = sshll.u32 %s717_s16, 4  ;;  %s513_s17 = int_to_ptr.vmem [resolvable:$true] %s512_s17 }
 0x487   :  { %v275_v26 = vadd.f32 1.0, %v270_v25  ;;  %s682_s6 = scalar_lea.vmem %s513_s17, 256  ;;  %p687_p3 = scmp.lt.s32.totalorder %s513_s17, %s513_s17 }
 0x488   :  { %p683_p2 = scmp.ne.s32.totalorder %s513_s17, %s682_s6  ;;  %p688_p4 = scmp.lt.s32.totalorder %s682_s6, %s682_s6 }
 0x489   :  { %v500_v27 = vrot.slane %v275_v26, %v383_v6 }
 0x48a   :  { %p689_p5 = por %p688_p4, %p687_p3 }
 0x48c   :  { %p690_p6 = pnand %p689_p5, %p683_p2 }
 0x54f   :  { %v490_v28 = vpop.f32.mrb[12].mxu1 }
 0x550   :  { %v501_v29 = vmul.f32 %v500_v27, %v490_v28  ;;  %v622_v30 = vpop.f32.mrb[13].mxu1 }
 0x551   :  { %v493_v31 = vpop.f32.mrb[14].mxu1 }
 0x552   :  { %v503_v32 = vmax.f32 %v501_v29, 0.0  ;;  %v502_v33 = vmul.f32 %v500_v27, %v493_v31  ;;  %v623_v34 = vpop.f32.mrb[15].mxu1 }
 0x554   :  { %505 = vst [vmem:[#allocation5] sm:$0xff] %v503_v32  ;;  %v504_v35 = vmax.f32 %v502_v33, 0.0 }
 0x556   :  { %506 = vst [vmem:[#allocation5 + $0x8] sm:$0xff] %v504_v35 }
 0x557   :  { %693 = shalt.err (!%p690_p6)
}
 0x558   :  { %s694_s19 = scalar_lea.hbm %s865_s5, 256 }
 0x559   :  { %p695_p7 = scmp.ne.s32.totalorder %s865_s5, %s694_s19  ;;  %p698_p8 = scmp.lt.u32.totalorder %s694_s19, %s865_s5 }
 0x55b   :  { %p700_p9 = pnand %p698_p8, %p695_p7 }
 0x55d   :  { %703 = shalt.err (!%p700_p9)
}
 0x55e   :  { %s718_s23 = smov 128   ;;  %s719_s24 = smov 8  }
 0x55f   :  { %518 = dma.vmem_to_hbm [thread:$0]  %s513_s17, 256, %s865_s5, [#allocation4], %s718_s23, %s718_s23, %s719_s24  }
 0x560   :  { %706 = dma.done.wait [#allocation4], 256  }
 0x561   :  { %707 = vsyncadd [#allocation4], 4294967040 }
 0x562   :  { %708 = dma.done.wait [#allocation7], 16  }
 0x563   :  { %709 = vsyncadd [#allocation7], 4294967280 }
 0x564   :  { %535 = vsyncpa [#allocation3], 1 }
 0x565   :  { %536 = vsyncpa [#allocation4], 1 }
 0x566   :  { %537 = vsyncpa [#allocation7], 1 }

</bundles_post_ra>
